<compile_context>
chip_gen: v7x
topology: tpu7x:2x2x1
jax: 0.10.0
libtpu: 0.0.40
codegen_flags: <defaults>
</compile_context>

<pallas_src>
import functools

import jax
import jax.numpy as jnp
from jax.experimental import pallas as pl
from jax.experimental.pallas import tpu as pltpu


# ---------------------------------------------------------------------------
# Kernels
# ---------------------------------------------------------------------------

_DOT_DIMS = (((1,), (1,)), ((), ()))  # contract last dims: (M,K) x (N,K) -> (M,N)


def _linear_t_single_block_kernel(w_ref, x_ref, o_ref):
    """Whole problem in one VMEM block: out = W @ x^T without materializing x^T."""
    o_ref[...] = jax.lax.dot_general(
        w_ref[...], x_ref[...],
        dimension_numbers=_DOT_DIMS,
        preferred_element_type=jnp.float32,
    ).astype(o_ref.dtype)


def _linear_t_kernel_f32_out(w_ref, x_ref, o_ref):
    """Tiled kernel, f32 output: accumulate directly into the resident o_ref tile."""
    k = pl.program_id(2)

    @pl.when(k == 0)
    def _():
        o_ref[...] = jnp.zeros_like(o_ref)

    o_ref[...] += jax.lax.dot_general(
        w_ref[...], x_ref[...],
        dimension_numbers=_DOT_DIMS,
        preferred_element_type=jnp.float32,
    )


def _linear_t_kernel_acc(w_ref, x_ref, o_ref, acc_ref):
    """Tiled kernel, non-f32 output: f32 VMEM accumulator, flushed at last k."""
    k = pl.program_id(2)

    @pl.when(k == 0)
    def _():
        acc_ref[...] = jnp.zeros_like(acc_ref)

    acc_ref[...] += jax.lax.dot_general(
        w_ref[...], x_ref[...],
        dimension_numbers=_DOT_DIMS,
        preferred_element_type=jnp.float32,
    )

    @pl.when(k == pl.num_programs(2) - 1)
    def _():
        o_ref[...] = acc_ref[...].astype(o_ref.dtype)


# ---------------------------------------------------------------------------
# Tiling helpers
# ---------------------------------------------------------------------------

_SMALL_PROBLEM_BYTES = 2 * 1024 * 1024  # single-block fast-path threshold


def _round_up(a, b):
    return (a + b - 1) // b * b


@functools.lru_cache(maxsize=None)
def _vmem_capacity_bytes():
    """Per-core VMEM capacity; conservative (v7x = 64 MiB) if the query fails."""
    try:
        info = pltpu.get_tpu_info()
        cap = getattr(info, "vmem_capacity_bytes", None)
        if cap:
            return int(cap)
    except Exception:
        pass
    return 64 * 1024 * 1024


def _pick_tile(dim, align, target):
    """Return (tile, padded_dim). tile % align == 0 and tile divides padded_dim.

    Prefers tiles that divide the align-rounded dim (no extra padding); only
    pads up to a full `target` tile if the available divisors are degenerate.
    """
    d = _round_up(dim, align)
    target = max(align, (target // align) * align)
    if d <= target:
        return d, d
    best = align
    t = align
    while t <= target:
        if d % t == 0:
            best = t
        t += align
    if best * 4 < target:
        # Only tiny divisors exist -> accept padding rather than degenerate blocks.
        return target, _round_up(dim, target)
    return best, d


def _largest_proper_divisor(d, align, cur):
    """Largest multiple of `align` strictly below `cur` that divides `d` (or None)."""
    best = None
    t = align
    while t < cur:
        if d % t == 0:
            best = t
        t += align
    return best


# ---------------------------------------------------------------------------
# Wrapper
# ---------------------------------------------------------------------------

@functools.partial(jax.jit, static_argnames=("tm", "tn", "tk", "mxu_dtype"))
def linear_t(x, w, *, tm=None, tn=None, tk=None, mxu_dtype="auto"):
    """x: [N, dim_in], w: [dim_out, dim_in] -> [dim_out, N]  (== (x @ W^T)^T).

    mxu_dtype: "auto" (bf16 MXU feed for f32 inputs with dim_in >= 1024,
    f32 accumulation kept — loosen tolerances accordingly), None (keep input
    dtype), or an explicit dtype such as jnp.bfloat16.
    """
    n, dim_in = x.shape
    dim_out, dim_in_w = w.shape
    assert dim_in == dim_in_w, (dim_in, dim_in_w)
    out_dtype = x.dtype
    out_itemsize = jnp.dtype(out_dtype).itemsize

    # -------- Small-problem fast path: one block, no grid / pad / slice. -----
    small_bytes = (w.size + x.size + dim_out * n) * out_itemsize
    if tm is None and tn is None and tk is None and small_bytes <= _SMALL_PROBLEM_BYTES:
        return pl.pallas_call(
            _linear_t_single_block_kernel,
            out_shape=jax.ShapeDtypeStruct((dim_out, n), out_dtype),
        )(w.astype(out_dtype), x)

    # -------- Compute dtype (optional bf16 MXU feed, f32 accumulation). ------
    if mxu_dtype == "auto":
        mxu_dtype = jnp.bfloat16 if (out_dtype == jnp.float32 and dim_in >= 1024) else None
    compute_dtype = out_dtype if mxu_dtype is None else jnp.dtype(mxu_dtype)
    in_itemsize = jnp.dtype(compute_dtype).itemsize
    sublane = max(8, 32 // in_itemsize)  # 8 for f32, 16 for bf16, 32 for fp8/int8

    # -------- Generation-aware tile targets & VMEM budget. -------------------
    vmem_cap = _vmem_capacity_bytes()
    big_vmem = vmem_cap >= 100 * 1024 * 1024          # v5e/v6e (128 MiB) vs v7x (64 MiB)
    vmem_limit = int(min(vmem_cap * 3 // 4, 100 * 1024 * 1024))
    t_mn = 1024 if big_vmem else 512
    t_k = 2048 if (big_vmem or in_itemsize <= 2) else 1024

    if tm is None:
        tm, m_pad = _pick_tile(dim_out, sublane, t_mn)
    else:
        assert tm % sublane == 0, f"tm={tm} must be a multiple of {sublane}"
        m_pad = _round_up(dim_out, tm)
    if tn is None:
        tn, n_pad = _pick_tile(n, 128, t_mn)
    else:
        assert tn % 128 == 0, f"tn={tn} must be a multiple of 128"
        n_pad = _round_up(n, tn)
    if tk is None:
        tk, k_pad = _pick_tile(dim_in, 128, t_k)
    else:
        assert tk % 128 == 0, f"tk={tk} must be a multiple of 128"
        k_pad = _round_up(dim_in, tk)

    use_scratch = out_dtype != jnp.float32

    def _working_set(tm_, tn_, tk_):
        acc = tm_ * tn_ * 4 if use_scratch else 0
        return (2 * (tm_ * tk_ + tk_ * tn_) * in_itemsize
                + 2 * tm_ * tn_ * out_itemsize + acc)

    # Shrink until the double-buffered working set fits the VMEM budget.
    while _working_set(tm, tn, tk) > vmem_limit:
        if tk > 128:
            tk, k_pad = _pick_tile(dim_in, 128, max(128, tk // 2))
        elif tn > 128:
            tn, n_pad = _pick_tile(n, 128, max(128, tn // 2))
        elif tm > sublane:
            tm, m_pad = _pick_tile(dim_out, sublane, max(sublane, tm // 2))
        else:
            break

    # On 2-TC chips (v7x, 64 MiB VMEM) make sure both cores get parallel work.
    if not big_vmem and (m_pad // tm) * (n_pad // tn) < 2:
        split_m = _largest_proper_divisor(m_pad, sublane, tm)
        if split_m is not None:
            tm = split_m
        elif (d := _largest_proper_divisor(n_pad, 128, tn)) is not None:
            tn = d

    # -------- Cast + minimal padding (alignment only in the common case). ----
    w_p = w.astype(compute_dtype) if w.dtype != compute_dtype else w
    x_p = x.astype(compute_dtype) if x.dtype != compute_dtype else x
    if (m_pad, k_pad) != (dim_out, dim_in):
        w_p = jnp.pad(w_p, ((0, m_pad - dim_out), (0, k_pad - dim_in)))
    if (n_pad, k_pad) != (n, dim_in):
        x_p = jnp.pad(x_p, ((0, n_pad - n), (0, k_pad - dim_in)))

    grid = (m_pad // tm, n_pad // tn, k_pad // tk)

    cost = pl.CostEstimate(
        flops=2 * m_pad * n_pad * k_pad,
        transcendentals=0,
        bytes_accessed=(
            grid[1] * m_pad * k_pad * in_itemsize     # W re-streamed per N block
            + grid[0] * n_pad * k_pad * in_itemsize   # x re-streamed per M block
            + m_pad * n_pad * out_itemsize
        ),
    )

    if use_scratch:
        kernel = _linear_t_kernel_acc
        scratch = [pltpu.VMEM((tm, tn), jnp.float32)]
    else:
        kernel = _linear_t_kernel_f32_out
        scratch = []

    out_p = pl.pallas_call(
        kernel,
        out_shape=jax.ShapeDtypeStruct((m_pad, n_pad), out_dtype),
        grid=grid,
        in_specs=[
            pl.BlockSpec((tm, tk), lambda i, j, k: (i, k)),   # W tile  [dim_out, dim_in]
            pl.BlockSpec((tn, tk), lambda i, j, k: (j, k)),   # x tile  [N, dim_in] (no pre-transpose)
        ],
        out_specs=pl.BlockSpec((tm, tn), lambda i, j, k: (i, j)),
        scratch_shapes=scratch,
        compiler_params=pltpu.CompilerParams(
            dimension_semantics=("parallel", "parallel", "arbitrary"),
            vmem_limit_bytes=vmem_limit,
        ),
        cost_estimate=cost,
    )(w_p, x_p)

    return out_p[:dim_out, :n]


# ---------------------------------------------------------------------------
# Self-test
# ---------------------------------------------------------------------------

if __name__ == "__main__":
    key = jax.random.PRNGKey(0)
    k_w, k_x, k_w2, k_x2 = jax.random.split(key, 4)

    # --- Small DGP-like shapes (single-block fast path) ---
    N, DIM_IN, DIM_OUT = 8, 32, 16
    bound = 1.0 / jnp.sqrt(jnp.float32(DIM_IN))
    w = jax.random.uniform(k_w, (DIM_OUT, DIM_IN), jnp.float32, -bound, bound)
    x = jax.random.normal(k_x, (N, DIM_IN), jnp.float32)

    out = linear_t(x, w)
    jax.block_until_ready(out)
    ref = jnp.dot(x, w.T, precision=jax.lax.Precision.HIGHEST).T
    assert out.shape == (DIM_OUT, N), out.shape
    assert jnp.allclose(out, ref, atol=1e-3, rtol=1e-3), "small-path mismatch vs reference"

    # --- Exercise the tiled grid path (explicit tiles force it; pads M 200->256) ---
    N2, DIM_IN2, DIM_OUT2 = 256, 512, 200
    bound2 = 1.0 / jnp.sqrt(jnp.float32(DIM_IN2))
    w2 = jax.random.uniform(k_w2, (DIM_OUT2, DIM_IN2), jnp.float32, -bound2, bound2)
    x2 = jax.random.normal(k_x2, (N2, DIM_IN2), jnp.float32)

    out2 = linear_t(x2, w2, tm=128, tn=128, tk=256)
    jax.block_until_ready(out2)
    ref2 = jnp.dot(x2, w2.T, precision=jax.lax.Precision.HIGHEST).T
    assert out2.shape == (DIM_OUT2, N2), out2.shape
    assert jnp.allclose(out2, ref2, atol=5e-3, rtol=5e-3), "tiled-path mismatch vs reference"

    print("KERNEL_OK")
</pallas_src>

<mosaic_0001>
module attributes {stable_mosaic.version = 11 : i64} {
  func.func @_linear_t_single_block_kernel(%arg0: memref<16x32xf32, #tpu.memory_space<vmem>>, %arg1: memref<8x32xf32, #tpu.memory_space<vmem>>, %arg2: memref<16x8xf32, #tpu.memory_space<vmem>>) attributes {dimension_semantics = [], scalar_prefetch = 0 : i64, scratch_operands = 0 : i64, tpu.core_type = #tpu.core_type<tc>} {
    %c0 = arith.constant 0 : index
    %c0_0 = arith.constant 0 : index
    %0 = vector.load %arg0[%c0, %c0_0] : memref<16x32xf32, #tpu.memory_space<vmem>>, vector<16x32xf32>
    %c0_1 = arith.constant 0 : index
    %c0_2 = arith.constant 0 : index
    %1 = vector.load %arg1[%c0_1, %c0_2] : memref<8x32xf32, #tpu.memory_space<vmem>>, vector<8x32xf32>
    %cst = arith.constant dense<0.000000e+00> : vector<16x8xf32>
    %2 = tpu.matmul %0, %1, %cst {dimension_numbers = #tpu.dot_dimension_numbers<[1], [1], [0], [0], [0, 0, 1, 0], [], []>} : vector<16x32xf32>, vector<8x32xf32>, vector<16x8xf32> -> vector<16x8xf32>
    %c0_3 = arith.constant 0 : index
    %c0_4 = arith.constant 0 : index
    %3 = vector.load %arg2[%c0_3, %c0_4] : memref<16x8xf32, #tpu.memory_space<vmem>>, vector<16x8xf32>
    tpu.vector_store %arg2[%c0_3, %c0_4], %2 {strides = array<i32>} : memref<16x8xf32, #tpu.memory_space<vmem>>, vector<16x8xf32>,
    return
  }
}

</mosaic_0001>

<bundles_post_ra>
// kernel: linear_t.1
= control target key start
LH: loop header
LB: loop body
LE: loop exit
PB: predicated region body
PF: predicated region fallthrough
CT: control target
= control target key end

     0   :  { %7 = vsyncpa [#allocation3], 0  ;;  %s246_s0 = inlined_call_operand.hbm [shape: f32[16,32], index: 0, kind: input, shape index: {}]   ;;  %s247_s1 = inlined_call_operand.hbm [shape: f32[8,32], index: 1, kind: input, shape index: {}]   ;;  %s248_s2 = inlined_call_operand.vmem [shape: f32[16,8], index: 2, kind: output, shape index: {}]  }
   0x1   :  { %8 = vsyncpa [#allocation5], 0  ;;  %s197_s9 = smov [#allocation2]   ;;  %s149_s13 = scalar_lea.hbm %s246_s0, 256 }
   0x2   :  { %s14_s10 = sshll.u32 %s197_s9, 4  ;;  %p150_p0 = scmp.ne.s32.totalorder %s246_s0, %s149_s13  ;;  %s15_s10 = int_to_ptr.vmem [resolvable:$true] %s14_s10 }
   0x3   :  { %p153_p1 = scmp.lt.u32.totalorder %s149_s13, %s246_s0 }
   0x5   :  { %p155_p2 = pnand %p153_p1, %p150_p0 }
   0x7   :  { %158 = shalt.err (!%p155_p2)
}
   0x8   :  { %s159_s18 = scalar_lea.vmem %s15_s10, 256  ;;  %p164_p4 = scmp.lt.s32.totalorder %s15_s10, %s15_s10 }
   0x9   :  { %p160_p3 = scmp.ne.s32.totalorder %s15_s10, %s159_s18  ;;  %p165_p5 = scmp.lt.s32.totalorder %s159_s18, %s159_s18 }
   0xb   :  { %p166_p6 = por %p165_p5, %p164_p4 }
   0xd   :  { %p167_p7 = pnand %p166_p6, %p160_p3 }
   0xf   :  { %170 = shalt.err (!%p167_p7)
}
  0x10   :  { %s198_s19 = smov 128   ;;  %s199_s20 = smov 8  }
  0x11   :  { %20 = dma.hbm_to_vmem [thread:$0]  %s246_s0, 256, %s15_s10, [#allocation3], %s198_s19, %s198_s19, %s199_s20  }
  0x12   :  { %s200_s23 = smov [#allocation4]   ;;  %s171_s27 = scalar_lea.hbm %s247_s1, 128 }
  0x13   :  { %s27_s24 = sshll.u32 %s200_s23, 4  ;;  %p172_p8 = scmp.ne.s32.totalorder %s247_s1, %s171_s27  ;;  %s28_s24 = int_to_ptr.vmem [resolvable:$true] %s27_s24 }
  0x14   :  { %p175_p9 = scmp.lt.u32.totalorder %s171_s27, %s247_s1 }
  0x16   :  { %p177_p10 = pnand %p175_p9, %p172_p8 }
  0x18   :  { %180 = shalt.err (!%p177_p10)
}
  0x19   :  { %s181_s4 = scalar_lea.vmem %s28_s24, 128  ;;  %p186_p12 = scmp.lt.s32.totalorder %s28_s24, %s28_s24 }
  0x1a   :  { %p182_p11 = scmp.ne.s32.totalorder %s28_s24, %s181_s4  ;;  %p187_p13 = scmp.lt.s32.totalorder %s181_s4, %s181_s4 }
  0x1c   :  { %p188_p0 = por %p187_p13, %p186_p12 }
  0x1e   :  { %p189_p1 = pnand %p188_p0, %p182_p11 }
  0x20   :  { %192 = shalt.err (!%p189_p1)
}
  0x21   :  { %30 = dma.hbm_to_vmem [thread:$0]  %s247_s1, 128, %s28_s24, [#allocation5]  }
  0x22   :  { %193 = dma.done.wait [#allocation3], 256  }
  0x23   :  { %194 = vsyncadd [#allocation3], 4294967040 }
  0x24   :  { %195 = dma.done.wait [#allocation5], 128  }
  0x25   :  { %196 = vsyncadd [#allocation5], 4294967168  ;;  %vm40_vm0 = vcmask 261120   ;;  %v39_v0 = vld [vmem:[#allocation4] sm:$0xff]  ;;  %v37_v1 = vld [vmem:[#allocation2] sm:$0xff]  ;;  %vm125_vm1 = vcmask 64512  }
  0x26   :  { %140 = vmatprep.subr.msk.mxu0 %vm40_vm0, %v39_v0  ;;  %142 = vmatprep.mubr.msk.f32.mxu0 %vm40_vm0, %v37_v1  ;;  %v38_v2 = vld [vmem:[#allocation2 + $0x8] sm:$0xff] }
  0x27   :  { %141 = vmatpush3.xpose.msk.msra.mxu0 %vm40_vm0, %v39_v0 }
  0x2a   :  { %143 = vmatmul.mubr.msk.f32.vlgmr.msra.gmra.mrb[0].mxu0 %vm40_vm0, %v38_v2 }
  0xfd   :  { %v144_v3 = vpop.f32.mrb[0].mxu0 }
  0xfe   :  { %127 = vst.msk [vmem:[%s248_s2 + $0x8] sm:$0xff] %vm125_vm1, %v144_v3  ;;  %v116_v4 = vpop.f32.mrb[1].mxu0 }
  0xff   :  { %126 = vst.msk [vmem:[%s248_s2] sm:$0xff] %vm125_vm1, %v116_v4 }
 0x100   :  { %132 = vsyncpa [#allocation3], 1 }
 0x101   :  { %133 = vsyncpa [#allocation5], 1 }

</bundles_post_ra>
